<compile_context>
chip_gen: v7x
topology: tpu7x:2x2x1
jax: 0.10.0
libtpu: 0.0.40
codegen_flags: <defaults>
</compile_context>

<pallas_src>
import functools

import jax
import jax.numpy as jnp
from jax import lax
from jax.experimental import pallas as pl
from jax.experimental.pallas import tpu as pltpu


# --------------------------------------------------------------------------
# Stage 1: hoisted input projection + serial tanh recurrence
# --------------------------------------------------------------------------
def rnn_recurrence_kernel(emb_ref, wih_ref, whh_ref, brnn_ref, h0_ref,
                          hs_ref, hT_ref):
    """Input projection (batched) + tanh recurrence.

    emb_ref : (T, B, D)  time-major word vectors
    wih_ref : (D, H)     W_ih^T
    whh_ref : (H, H)     W_hh^T
    brnn_ref: (1, H)     b_ih + b_hh
    h0_ref  : (B, H)     initial hidden state
    hs_ref  : (T, B, H)  OUT: all hidden states (time-major)
    hT_ref  : (B, H)     OUT: final hidden state
    """
    T, B, D = emb_ref.shape
    H = whh_ref.shape[1]

    # Hoisted, non-recurrent input projection: one MXU-friendly matmul with
    # T*B rows, staged directly in the output buffer (no scratch).
    pre_in = (jnp.dot(emb_ref[...].reshape(T * B, D), wih_ref[...],
                      preferred_element_type=jnp.float32)
              + brnn_ref[...])
    hs_ref[...] = pre_in.reshape(T, B, H)

    def step(t, h_prev):
        h_new = jnp.tanh(
            hs_ref[t]
            + jnp.dot(h_prev, whh_ref[...], preferred_element_type=jnp.float32))
        hs_ref[t] = h_new                       # overwrite pre-activation in place
        return h_new

    # Body is now tiny (one (B,H)x(H,H) matmul + tanh): full unroll for short T,
    # moderate unroll for long T to avoid code-size / vreg-spill blowup.
    unroll = True if T <= 32 else 4
    h_last = lax.fori_loop(0, T, step, h0_ref[...], unroll=unroll)
    hT_ref[...] = h_last


# --------------------------------------------------------------------------
# Stage 2: output projection + LogSoftmax over time, tiled over vocab
# --------------------------------------------------------------------------
def project_logsoftmax_kernel(hs_ref, wout_ref, bout_ref, out_ref):
    """One vocab block: batched projection + log-softmax over the T axis.

    hs_ref  : (T, B, H)   all hidden states (full, resident)
    wout_ref: (H, Vb)     vocab-block slice of W_out^T
    bout_ref: (1, Vb)     vocab-block slice of b_out
    out_ref : (T, B, Vb)  log-probs (softmax over T == torch LogSoftmax(dim=1))
    """
    T, B, H = hs_ref.shape
    Vb = wout_ref.shape[1]

    logits = (jnp.dot(hs_ref[...].reshape(T * B, H), wout_ref[...],
                      preferred_element_type=jnp.float32)
              + bout_ref[...]).reshape(T, B, Vb)

    # Numerically stable log-softmax over the time axis (independent per vocab
    # column, so vocab tiling is exact).
    m = jnp.max(logits, axis=0, keepdims=True)
    lse = jnp.log(jnp.sum(jnp.exp(logits - m), axis=0, keepdims=True)) + m
    out_ref[...] = logits - lse


def _pick_vocab_block(V):
    """Largest lane-dense block that tiles V exactly (else the full dim)."""
    for vb in (2048, 1024, 512, 256, 128):
        if V % vb == 0:
            return vb
    return V


# --------------------------------------------------------------------------
# Parameters / wrapper
# --------------------------------------------------------------------------
def init_params(key, vocab_size, wordvec_size, hidden_size):
    ks = jax.random.split(key, 7)
    scale = 0.1
    return {
        "emb_table": jax.random.normal(ks[0], (vocab_size, wordvec_size), jnp.float32) * scale,
        "w_ih": jax.random.normal(ks[1], (hidden_size, wordvec_size), jnp.float32) * scale,
        "w_hh": jax.random.normal(ks[2], (hidden_size, hidden_size), jnp.float32) * scale,
        "b_ih": jax.random.normal(ks[3], (hidden_size,), jnp.float32) * scale,
        "b_hh": jax.random.normal(ks[4], (hidden_size,), jnp.float32) * scale,
        "w_out": jax.random.normal(ks[5], (vocab_size, hidden_size), jnp.float32) * scale,
        "b_out": jax.random.normal(ks[6], (vocab_size,), jnp.float32) * scale,
    }


@jax.jit
def forward(x_tokens, params, h0):
    """x_tokens: (B, T) int32. Returns (log_probs (B, T, V), h_final (1, B, H))."""
    B, T = x_tokens.shape
    V, D = params["emb_table"].shape
    H = params["w_hh"].shape[0]

    # TODO(synk): embedding gather kept as plain jnp.take in the wrapper
    # (data-dependent gather); built directly time-major to avoid a transpose.
    emb_tm = jnp.take(params["emb_table"], x_tokens.T, axis=0).astype(jnp.float32)  # (T, B, D)

    wih_t = params["w_ih"].T                                    # (D, H)
    whh_t = params["w_hh"].T                                    # (H, H)
    brnn = (params["b_ih"] + params["b_hh"]).reshape(1, H)      # (1, H)
    wout_t = params["w_out"].T                                  # (H, V)
    bout = params["b_out"].reshape(1, V)                        # (1, V)
    h0_2d = h0.reshape(B, H).astype(jnp.float32)                # (B, H)

    vmem = pl.BlockSpec(memory_space=pltpu.MemorySpace.VMEM)

    # ---- Stage 1: recurrence (small tensors, fully resident) ----
    hs_tm, h_final = pl.pallas_call(
        rnn_recurrence_kernel,
        out_shape=(
            jax.ShapeDtypeStruct((T, B, H), jnp.float32),   # all hidden states
            jax.ShapeDtypeStruct((B, H), jnp.float32),      # final hidden state
        ),
        in_specs=[vmem] * 5,
        out_specs=(vmem, vmem),
    )(emb_tm, wih_t, whh_t, brnn, h0_2d)

    # ---- Stage 2: projection + log-softmax, tiled + parallel over vocab ----
    Vb = _pick_vocab_block(V)
    out_tm = pl.pallas_call(
        project_logsoftmax_kernel,
        out_shape=jax.ShapeDtypeStruct((T, B, V), jnp.float32),
        grid=(V // Vb,),
        in_specs=[
            pl.BlockSpec((T, B, H), lambda j: (0, 0, 0)),   # hidden states (resident)
            pl.BlockSpec((H, Vb), lambda j: (0, j)),        # W_out^T vocab block
            pl.BlockSpec((1, Vb), lambda j: (0, j)),        # b_out vocab block
        ],
        out_specs=pl.BlockSpec((T, B, Vb), lambda j: (0, 0, j)),
        compiler_params=pltpu.CompilerParams(
            dimension_semantics=("parallel",)),
    )(hs_tm, wout_t, bout)

    log_probs = jnp.transpose(out_tm, (1, 0, 2))                # (B, T, V) batch_first
    return log_probs, h_final.reshape(1, B, H)


# --------------------------------------------------------------------------
# Pure-JAX reference mirroring the PyTorch module
# --------------------------------------------------------------------------
def reference_forward(x_tokens, params, h0):
    emb = jnp.take(params["emb_table"], x_tokens, axis=0)       # (B, T, D)
    B, T, D = emb.shape
    H = params["w_hh"].shape[0]
    h = h0.reshape(B, H)

    def step(h, x_t):
        h_new = jnp.tanh(x_t @ params["w_ih"].T + params["b_ih"]
                         + h @ params["w_hh"].T + params["b_hh"])
        return h_new, h_new

    h_final, hs = lax.scan(step, h, jnp.transpose(emb, (1, 0, 2)))
    hs = jnp.transpose(hs, (1, 0, 2))                           # (B, T, H)
    logits = hs @ params["w_out"].T + params["b_out"]           # (B, T, V)
    log_probs = jax.nn.log_softmax(logits, axis=1)              # dim=1 == time, as in the PyTorch code
    return log_probs, h_final.reshape(1, B, -1)


if __name__ == "__main__":
    vocab_size, wordvec_size, hidden_size = 64, 32, 32
    batch, seq = 2, 8

    key = jax.random.PRNGKey(0)
    k_param, k_tok = jax.random.split(key)
    params = init_params(k_param, vocab_size, wordvec_size, hidden_size)

    x_tokens = jax.random.randint(k_tok, (batch, seq), 0, vocab_size, dtype=jnp.int32)
    h0 = jnp.zeros((1, batch, hidden_size), jnp.float32)        # Model.init_hidden()

    log_probs, h_final = forward(x_tokens, params, h0)
    jax.block_until_ready((log_probs, h_final))

    ref_lp, ref_h = reference_forward(x_tokens, params, h0)
    assert log_probs.shape == (batch, seq, vocab_size)
    assert h_final.shape == (1, batch, hidden_size)
    assert jnp.allclose(log_probs, ref_lp, atol=1e-5, rtol=1e-5)
    assert jnp.allclose(h_final, ref_h, atol=1e-5, rtol=1e-5)

    print("KERNEL_OK")
</pallas_src>

<mosaic_0001>
module attributes {stable_mosaic.version = 11 : i64} {
  func.func @project_logsoftmax_kernel(%arg0: i32, %arg1: memref<8x2x32xf32, #tpu.memory_space<vmem>>, %arg2: memref<32x64xf32, #tpu.memory_space<vmem>>, %arg3: memref<1x64xf32, #tpu.memory_space<vmem>>, %arg4: memref<8x2x64xf32, #tpu.memory_space<vmem>>) attributes {dimension_semantics = [#tpu.dimension_semantics<parallel>], iteration_bounds = array<i64: 1>, scalar_prefetch = 0 : i64, scratch_operands = 0 : i64, tpu.core_type = #tpu.core_type<tc>, window_params = [{pipeline_mode = #tpu.pipeline_mode<synchronous>, transform_indices = @transform_0, window_bounds = array<i64: 8, 2, 32>}, {transform_indices = @transform_1, window_bounds = array<i64: 32, 64>}, {transform_indices = @transform_2, window_bounds = array<i64: 1, 64>}, {transform_indices = @transform_3, window_bounds = array<i64: 8, 2, 64>}]} {
    %c0 = arith.constant 0 : index
    %c0_0 = arith.constant 0 : index
    %c0_1 = arith.constant 0 : index
    %0 = vector.load %arg1[%c0, %c0_0, %c0_1] : memref<8x2x32xf32, #tpu.memory_space<vmem>>, vector<8x2x32xf32>
    %1 = vector.shape_cast %0 : vector<8x2x32xf32> to vector<16x32xf32>
    %c0_2 = arith.constant 0 : index
    %c0_3 = arith.constant 0 : index
    %2 = vector.load %arg2[%c0_2, %c0_3] : memref<32x64xf32, #tpu.memory_space<vmem>>, vector<32x64xf32>
    %cst = arith.constant dense<0.000000e+00> : vector<16x64xf32>
    %3 = tpu.matmul %1, %2, %cst {dimension_numbers = #tpu.dot_dimension_numbers<[1], [0], [0], [1], [0, 0, 1, 1], [], []>} : vector<16x32xf32>, vector<32x64xf32>, vector<16x64xf32> -> vector<16x64xf32>
    %c0_4 = arith.constant 0 : index
    %c0_5 = arith.constant 0 : index
    %4 = vector.load %arg3[%c0_4, %c0_5] : memref<1x64xf32, #tpu.memory_space<vmem>>, vector<1x64xf32>
    %5 = vector.broadcast %4 : vector<1x64xf32> to vector<16x64xf32>
    %6 = arith.addf %3, %5 : vector<16x64xf32>
    %7 = vector.shape_cast %6 : vector<16x64xf32> to vector<8x2x64xf32>
    %cst_6 = arith.constant dense<0xFF800000> : vector<2x64xf32>
    %8 = vector.multi_reduction <maximumf>, %7, %cst_6 [0] : vector<8x2x64xf32> to vector<2x64xf32>
    %9 = vector.shape_cast %8 : vector<2x64xf32> to vector<1x2x64xf32>
    %10 = vector.broadcast %9 : vector<1x2x64xf32> to vector<8x2x64xf32>
    %11 = arith.subf %7, %10 : vector<8x2x64xf32>
    %12 = math.exp %11 : vector<8x2x64xf32>
    %cst_7 = arith.constant dense<0.000000e+00> : vector<2x64xf32>
    %13 = vector.multi_reduction <add>, %12, %cst_7 [0] : vector<8x2x64xf32> to vector<2x64xf32>
    %14 = vector.shape_cast %13 : vector<2x64xf32> to vector<1x2x64xf32>
    %15 = math.log %14 : vector<1x2x64xf32>
    %16 = arith.addf %15, %9 : vector<1x2x64xf32>
    %17 = vector.broadcast %16 : vector<1x2x64xf32> to vector<8x2x64xf32>
    %18 = arith.subf %7, %17 : vector<8x2x64xf32>
    %c0_8 = arith.constant 0 : index
    %c0_9 = arith.constant 0 : index
    %c0_10 = arith.constant 0 : index
    %19 = vector.load %arg4[%c0_8, %c0_9, %c0_10] : memref<8x2x64xf32, #tpu.memory_space<vmem>>, vector<8x2x64xf32>
    tpu.vector_store %arg4[%c0_8, %c0_9, %c0_10], %18 {strides = array<i32>} : memref<8x2x64xf32, #tpu.memory_space<vmem>>, vector<8x2x64xf32>,
    return
  }
  func.func @transform_0(%arg0: i32) -> (i32, i32, i32) {
    %c0_i32 = arith.constant 0 : i32
    %c0_i32_0 = arith.constant 0 : i32
    %c0_i32_1 = arith.constant 0 : i32
    %c0_i32_2 = arith.constant 0 : i32
    return %c0_i32, %c0_i32_0, %c0_i32_1 : i32, i32, i32
  }
  func.func @transform_1(%arg0: i32) -> (i32, i32) {
    %c0_i32 = arith.constant 0 : i32
    %c0_i32_0 = arith.constant 0 : i32
    return %c0_i32, %arg0 : i32, i32
  }
  func.func @transform_2(%arg0: i32) -> (i32, i32) {
    %c0_i32 = arith.constant 0 : i32
    %c0_i32_0 = arith.constant 0 : i32
    return %c0_i32, %arg0 : i32, i32
  }
  func.func @transform_3(%arg0: i32) -> (i32, i32, i32) {
    %c0_i32 = arith.constant 0 : i32
    %c0_i32_0 = arith.constant 0 : i32
    %c0_i32_1 = arith.constant 0 : i32
    return %c0_i32, %c0_i32_0, %arg0 : i32, i32, i32
  }
}

module attributes {stable_mosaic.version = 11 : i64} {
  func.func @rnn_recurrence_kernel(%arg0: memref<8x2x32xf32, #tpu.memory_space<vmem>>, %arg1: memref<32x32xf32, #tpu.memory_space<vmem>>, %arg2: memref<32x32xf32, #tpu.memory_space<vmem>>, %arg3: memref<1x32xf32, #tpu.memory_space<vmem>>, %arg4: memref<2x32xf32, #tpu.memory_space<vmem>>, %arg5: memref<8x2x32xf32, #tpu.memory_space<vmem>>, %arg6: memref<2x32xf32, #tpu.memory_space<vmem>>) attributes {dimension_semantics = [], scalar_prefetch = 0 : i64, scratch_operands = 0 : i64, tpu.core_type = #tpu.core_type<tc>} {
    %c0 = arith.constant 0 : index
    %c0_0 = arith.constant 0 : index
    %c0_1 = arith.constant 0 : index
    %0 = vector.load %arg0[%c0, %c0_0, %c0_1] : memref<8x2x32xf32, #tpu.memory_space<vmem>>, vector<8x2x32xf32>
    %1 = vector.shape_cast %0 : vector<8x2x32xf32> to vector<16x32xf32>
    %c0_2 = arith.constant 0 : index
    %c0_3 = arith.constant 0 : index
    %2 = vector.load %arg1[%c0_2, %c0_3] : memref<32x32xf32, #tpu.memory_space<vmem>>, vector<32x32xf32>
    %cst = arith.constant dense<0.000000e+00> : vector<16x32xf32>
    %3 = tpu.matmul %1, %2, %cst {dimension_numbers = #tpu.dot_dimension_numbers<[1], [0], [0], [1], [0, 0, 1, 1], [], []>} : vector<16x32xf32>, vector<32x32xf32>, vector<16x32xf32> -> vector<16x32xf32>
    %c0_4 = arith.constant 0 : index
    %c0_5 = arith.constant 0 : index
    %4 = vector.load %arg3[%c0_4, %c0_5] : memref<1x32xf32, #tpu.memory_space<vmem>>, vector<1x32xf32>
    %5 = vector.broadcast %4 : vector<1x32xf32> to vector<16x32xf32>
    %6 = arith.addf %3, %5 : vector<16x32xf32>
    %7 = vector.shape_cast %6 : vector<16x32xf32> to vector<8x2x32xf32>
    %c0_6 = arith.constant 0 : index
    %c0_7 = arith.constant 0 : index
    %c0_8 = arith.constant 0 : index
    %8 = vector.load %arg5[%c0_6, %c0_7, %c0_8] : memref<8x2x32xf32, #tpu.memory_space<vmem>>, vector<8x2x32xf32>
    tpu.vector_store %arg5[%c0_6, %c0_7, %c0_8], %7 {strides = array<i32>} : memref<8x2x32xf32, #tpu.memory_space<vmem>>, vector<8x2x32xf32>,
    %c0_9 = arith.constant 0 : index
    %c0_10 = arith.constant 0 : index
    %9 = vector.load %arg4[%c0_9, %c0_10] : memref<2x32xf32, #tpu.memory_space<vmem>>, vector<2x32xf32>
    %c0_i32 = arith.constant 0 : i32
    %10 = arith.index_cast %c0_i32 : i32 to index
    %c0_11 = arith.constant 0 : index
    %c0_12 = arith.constant 0 : index
    %11 = vector.load %arg5[%10, %c0_11, %c0_12] : memref<8x2x32xf32, #tpu.memory_space<vmem>>, vector<1x2x32xf32>
    %12 = vector.shape_cast %11 : vector<1x2x32xf32> to vector<2x32xf32>
    %c0_13 = arith.constant 0 : index
    %c0_14 = arith.constant 0 : index
    %13 = vector.load %arg2[%c0_13, %c0_14] : memref<32x32xf32, #tpu.memory_space<vmem>>, vector<32x32xf32>
    %cst_15 = arith.constant dense<0.000000e+00> : vector<2x32xf32>
    %14 = tpu.matmul %9, %13, %cst_15 {dimension_numbers = #tpu.dot_dimension_numbers<[1], [0], [0], [1], [0, 0, 1, 1], [], []>} : vector<2x32xf32>, vector<32x32xf32>, vector<2x32xf32> -> vector<2x32xf32>
    %15 = arith.addf %12, %14 : vector<2x32xf32>
    %16 = math.tanh %15 : vector<2x32xf32>
    %17 = arith.index_cast %c0_i32 : i32 to index
    %c0_16 = arith.constant 0 : index
    %c0_17 = arith.constant 0 : index
    %18 = vector.load %arg5[%17, %c0_16, %c0_17] : memref<8x2x32xf32, #tpu.memory_space<vmem>>, vector<1x2x32xf32>
    %19 = vector.shape_cast %18 : vector<1x2x32xf32> to vector<2x32xf32>
    %20 = vector.shape_cast %16 : vector<2x32xf32> to vector<1x2x32xf32>
    tpu.vector_store %arg5[%17, %c0_16, %c0_17], %20 {strides = array<i32>} : memref<8x2x32xf32, #tpu.memory_space<vmem>>, vector<1x2x32xf32>,
    %c1_i32 = arith.constant 1 : i32
    %21 = arith.index_cast %c1_i32 : i32 to index
    %c0_18 = arith.constant 0 : index
    %c0_19 = arith.constant 0 : index
    %22 = vector.load %arg5[%21, %c0_18, %c0_19] : memref<8x2x32xf32, #tpu.memory_space<vmem>>, vector<1x2x32xf32>
    %23 = vector.shape_cast %22 : vector<1x2x32xf32> to vector<2x32xf32>
    %c0_20 = arith.constant 0 : index
    %c0_21 = arith.constant 0 : index
    %24 = vector.load %arg2[%c0_20, %c0_21] : memref<32x32xf32, #tpu.memory_space<vmem>>, vector<32x32xf32>
    %cst_22 = arith.constant dense<0.000000e+00> : vector<2x32xf32>
    %25 = tpu.matmul %16, %24, %cst_22 {dimension_numbers = #tpu.dot_dimension_numbers<[1], [0], [0], [1], [0, 0, 1, 1], [], []>} : vector<2x32xf32>, vector<32x32xf32>, vector<2x32xf32> -> vector<2x32xf32>
    %26 = arith.addf %23, %25 : vector<2x32xf32>
    %27 = math.tanh %26 : vector<2x32xf32>
    %28 = arith.index_cast %c1_i32 : i32 to index
    %c0_23 = arith.constant 0 : index
    %c0_24 = arith.constant 0 : index
    %29 = vector.load %arg5[%28, %c0_23, %c0_24] : memref<8x2x32xf32, #tpu.memory_space<vmem>>, vector<1x2x32xf32>
    %30 = vector.shape_cast %29 : vector<1x2x32xf32> to vector<2x32xf32>
    %31 = vector.shape_cast %27 : vector<2x32xf32> to vector<1x2x32xf32>
    tpu.vector_store %arg5[%28, %c0_23, %c0_24], %31 {strides = array<i32>} : memref<8x2x32xf32, #tpu.memory_space<vmem>>, vector<1x2x32xf32>,
    %c2_i32 = arith.constant 2 : i32
    %32 = arith.index_cast %c2_i32 : i32 to index
    %c0_25 = arith.constant 0 : index
    %c0_26 = arith.constant 0 : index
    %33 = vector.load %arg5[%32, %c0_25, %c0_26] : memref<8x2x32xf32, #tpu.memory_space<vmem>>, vector<1x2x32xf32>
    %34 = vector.shape_cast %33 : vector<1x2x32xf32> to vector<2x32xf32>
    %c0_27 = arith.constant 0 : index
    %c0_28 = arith.constant 0 : index
    %35 = vector.load %arg2[%c0_27, %c0_28] : memref<32x32xf32, #tpu.memory_space<vmem>>, vector<32x32xf32>
    %cst_29 = arith.constant dense<0.000000e+00> : vector<2x32xf32>
    %36 = tpu.matmul %27, %35, %cst_29 {dimension_numbers = #tpu.dot_dimension_numbers<[1], [0], [0], [1], [0, 0, 1, 1], [], []>} : vector<2x32xf32>, vector<32x32xf32>, vector<2x32xf32> -> vector<2x32xf32>
    %37 = arith.addf %34, %36 : vector<2x32xf32>
    %38 = math.tanh %37 : vector<2x32xf32>
    %39 = arith.index_cast %c2_i32 : i32 to index
    %c0_30 = arith.constant 0 : index
    %c0_31 = arith.constant 0 : index
    %40 = vector.load %arg5[%39, %c0_30, %c0_31] : memref<8x2x32xf32, #tpu.memory_space<vmem>>, vector<1x2x32xf32>
    %41 = vector.shape_cast %40 : vector<1x2x32xf32> to vector<2x32xf32>
    %42 = vector.shape_cast %38 : vector<2x32xf32> to vector<1x2x32xf32>
    tpu.vector_store %arg5[%39, %c0_30, %c0_31], %42 {strides = array<i32>} : memref<8x2x32xf32, #tpu.memory_space<vmem>>, vector<1x2x32xf32>,
    %c3_i32 = arith.constant 3 : i32
    %43 = arith.index_cast %c3_i32 : i32 to index
    %c0_32 = arith.constant 0 : index
    %c0_33 = arith.constant 0 : index
    %44 = vector.load %arg5[%43, %c0_32, %c0_33] : memref<8x2x32xf32, #tpu.memory_space<vmem>>, vector<1x2x32xf32>
    %45 = vector.shape_cast %44 : vector<1x2x32xf32> to vector<2x32xf32>
    %c0_34 = arith.constant 0 : index
    %c0_35 = arith.constant 0 : index
    %46 = vector.load %arg2[%c0_34, %c0_35] : memref<32x32xf32, #tpu.memory_space<vmem>>, vector<32x32xf32>
    %cst_36 = arith.constant dense<0.000000e+00> : vector<2x32xf32>
    %47 = tpu.matmul %38, %46, %cst_36 {dimension_numbers = #tpu.dot_dimension_numbers<[1], [0], [0], [1], [0, 0, 1, 1], [], []>} : vector<2x32xf32>, vector<32x32xf32>, vector<2x32xf32> -> vector<2x32xf32>
    %48 = arith.addf %45, %47 : vector<2x32xf32>
    %49 = math.tanh %48 : vector<2x32xf32>
    %50 = arith.index_cast %c3_i32 : i32 to index
    %c0_37 = arith.constant 0 : index
    %c0_38 = arith.constant 0 : index
    %51 = vector.load %arg5[%50, %c0_37, %c0_38] : memref<8x2x32xf32, #tpu.memory_space<vmem>>, vector<1x2x32xf32>
    %52 = vector.shape_cast %51 : vector<1x2x32xf32> to vector<2x32xf32>
    %53 = vector.shape_cast %49 : vector<2x32xf32> to vector<1x2x32xf32>
    tpu.vector_store %arg5[%50, %c0_37, %c0_38], %53 {strides = array<i32>} : memref<8x2x32xf32, #tpu.memory_space<vmem>>, vector<1x2x32xf32>,
    %c4_i32 = arith.constant 4 : i32
    %54 = arith.index_cast %c4_i32 : i32 to index
    %c0_39 = arith.constant 0 : index
    %c0_40 = arith.constant 0 : index
    %55 = vector.load %arg5[%54, %c0_39, %c0_40] : memref<8x2x32xf32, #tpu.memory_space<vmem>>, vector<1x2x32xf32>
    %56 = vector.shape_cast %55 : vector<1x2x32xf32> to vector<2x32xf32>
    %c0_41 = arith.constant 0 : index
    %c0_42 = arith.constant 0 : index
    %57 = vector.load %arg2[%c0_41, %c0_42] : memref<32x32xf32, #tpu.memory_space<vmem>>, vector<32x32xf32>
    %cst_43 = arith.constant dense<0.000000e+00> : vector<2x32xf32>
    %58 = tpu.matmul %49, %57, %cst_43 {dimension_numbers = #tpu.dot_dimension_numbers<[1], [0], [0], [1], [0, 0, 1, 1], [], []>} : vector<2x32xf32>, vector<32x32xf32>, vector<2x32xf32> -> vector<2x32xf32>
    %59 = arith.addf %56, %58 : vector<2x32xf32>
    %60 = math.tanh %59 : vector<2x32xf32>
    %61 = arith.index_cast %c4_i32 : i32 to index
    %c0_44 = arith.constant 0 : index
    %c0_45 = arith.constant 0 : index
    %62 = vector.load %arg5[%61, %c0_44, %c0_45] : memref<8x2x32xf32, #tpu.memory_space<vmem>>, vector<1x2x32xf32>
    %63 = vector.shape_cast %62 : vector<1x2x32xf32> to vector<2x32xf32>
    %64 = vector.shape_cast %60 : vector<2x32xf32> to vector<1x2x32xf32>
    tpu.vector_store %arg5[%61, %c0_44, %c0_45], %64 {strides = array<i32>} : memref<8x2x32xf32, #tpu.memory_space<vmem>>, vector<1x2x32xf32>,
    %c5_i32 = arith.constant 5 : i32
    %65 = arith.index_cast %c5_i32 : i32 to index
    %c0_46 = arith.constant 0 : index
    %c0_47 = arith.constant 0 : index
    %66 = vector.load %arg5[%65, %c0_46, %c0_47] : memref<8x2x32xf32, #tpu.memory_space<vmem>>, vector<1x2x32xf32>
    %67 = vector.shape_cast %66 : vector<1x2x32xf32> to vector<2x32xf32>
    %c0_48 = arith.constant 0 : index
    %c0_49 = arith.constant 0 : index
    %68 = vector.load %arg2[%c0_48, %c0_49] : memref<32x32xf32, #tpu.memory_space<vmem>>, vector<32x32xf32>
    %cst_50 = arith.constant dense<0.000000e+00> : vector<2x32xf32>
    %69 = tpu.matmul %60, %68, %cst_50 {dimension_numbers = #tpu.dot_dimension_numbers<[1], [0], [0], [1], [0, 0, 1, 1], [], []>} : vector<2x32xf32>, vector<32x32xf32>, vector<2x32xf32> -> vector<2x32xf32>
    %70 = arith.addf %67, %69 : vector<2x32xf32>
    %71 = math.tanh %70 : vector<2x32xf32>
    %72 = arith.index_cast %c5_i32 : i32 to index
    %c0_51 = arith.constant 0 : index
    %c0_52 = arith.constant 0 : index
    %73 = vector.load %arg5[%72, %c0_51, %c0_52] : memref<8x2x32xf32, #tpu.memory_space<vmem>>, vector<1x2x32xf32>
    %74 = vector.shape_cast %73 : vector<1x2x32xf32> to vector<2x32xf32>
    %75 = vector.shape_cast %71 : vector<2x32xf32> to vector<1x2x32xf32>
    tpu.vector_store %arg5[%72, %c0_51, %c0_52], %75 {strides = array<i32>} : memref<8x2x32xf32, #tpu.memory_space<vmem>>, vector<1x2x32xf32>,
    %c6_i32 = arith.constant 6 : i32
    %76 = arith.index_cast %c6_i32 : i32 to index
    %c0_53 = arith.constant 0 : index
    %c0_54 = arith.constant 0 : index
    %77 = vector.load %arg5[%76, %c0_53, %c0_54] : memref<8x2x32xf32, #tpu.memory_space<vmem>>, vector<1x2x32xf32>
    %78 = vector.shape_cast %77 : vector<1x2x32xf32> to vector<2x32xf32>
    %c0_55 = arith.constant 0 : index
    %c0_56 = arith.constant 0 : index
    %79 = vector.load %arg2[%c0_55, %c0_56] : memref<32x32xf32, #tpu.memory_space<vmem>>, vector<32x32xf32>
    %cst_57 = arith.constant dense<0.000000e+00> : vector<2x32xf32>
    %80 = tpu.matmul %71, %79, %cst_57 {dimension_numbers = #tpu.dot_dimension_numbers<[1], [0], [0], [1], [0, 0, 1, 1], [], []>} : vector<2x32xf32>, vector<32x32xf32>, vector<2x32xf32> -> vector<2x32xf32>
    %81 = arith.addf %78, %80 : vector<2x32xf32>
    %82 = math.tanh %81 : vector<2x32xf32>
    %83 = arith.index_cast %c6_i32 : i32 to index
    %c0_58 = arith.constant 0 : index
    %c0_59 = arith.constant 0 : index
    %84 = vector.load %arg5[%83, %c0_58, %c0_59] : memref<8x2x32xf32, #tpu.memory_space<vmem>>, vector<1x2x32xf32>
    %85 = vector.shape_cast %84 : vector<1x2x32xf32> to vector<2x32xf32>
    %86 = vector.shape_cast %82 : vector<2x32xf32> to vector<1x2x32xf32>
    tpu.vector_store %arg5[%83, %c0_58, %c0_59], %86 {strides = array<i32>} : memref<8x2x32xf32, #tpu.memory_space<vmem>>, vector<1x2x32xf32>,
    %c7_i32 = arith.constant 7 : i32
    %87 = arith.index_cast %c7_i32 : i32 to index
    %c0_60 = arith.constant 0 : index
    %c0_61 = arith.constant 0 : index
    %88 = vector.load %arg5[%87, %c0_60, %c0_61] : memref<8x2x32xf32, #tpu.memory_space<vmem>>, vector<1x2x32xf32>
    %89 = vector.shape_cast %88 : vector<1x2x32xf32> to vector<2x32xf32>
    %c0_62 = arith.constant 0 : index
    %c0_63 = arith.constant 0 : index
    %90 = vector.load %arg2[%c0_62, %c0_63] : memref<32x32xf32, #tpu.memory_space<vmem>>, vector<32x32xf32>
    %cst_64 = arith.constant dense<0.000000e+00> : vector<2x32xf32>
    %91 = tpu.matmul %82, %90, %cst_64 {dimension_numbers = #tpu.dot_dimension_numbers<[1], [0], [0], [1], [0, 0, 1, 1], [], []>} : vector<2x32xf32>, vector<32x32xf32>, vector<2x32xf32> -> vector<2x32xf32>
    %92 = arith.addf %89, %91 : vector<2x32xf32>
    %93 = math.tanh %92 : vector<2x32xf32>
    %94 = arith.index_cast %c7_i32 : i32 to index
    %c0_65 = arith.constant 0 : index
    %c0_66 = arith.constant 0 : index
    %95 = vector.load %arg5[%94, %c0_65, %c0_66] : memref<8x2x32xf32, #tpu.memory_space<vmem>>, vector<1x2x32xf32>
    %96 = vector.shape_cast %95 : vector<1x2x32xf32> to vector<2x32xf32>
    %97 = vector.shape_cast %93 : vector<2x32xf32> to vector<1x2x32xf32>
    tpu.vector_store %arg5[%94, %c0_65, %c0_66], %97 {strides = array<i32>} : memref<8x2x32xf32, #tpu.memory_space<vmem>>, vector<1x2x32xf32>,
    %c8_i32 = arith.constant 8 : i32
    %c0_67 = arith.constant 0 : index
    %c0_68 = arith.constant 0 : index
    %98 = vector.load %arg6[%c0_67, %c0_68] : memref<2x32xf32, #tpu.memory_space<vmem>>, vector<2x32xf32>
    tpu.vector_store %arg6[%c0_67, %c0_68], %93 {strides = array<i32>} : memref<2x32xf32, #tpu.memory_space<vmem>>, vector<2x32xf32>,
    return
  }
}

</mosaic_0001>

<bundles_post_ra>
// kernel: forward.3
= control target key start
LH: loop header
LB: loop body
LE: loop exit
PB: predicated region body
PF: predicated region fallthrough
CT: control target
= control target key end

     0   :  { %v46_v0 = vlaneseq  ;;  %v324_v4 = vmov 1983009808   ;;  %vm75_vm0 = vcmask 261120   ;;  %vm199_vm1 = vcmask 517120   ;;  %s480_s1 = inlined_call_operand.vmem [shape: f32[32,64], index: 1, kind: input, shape index: {}]   ;;  %s481_s0 = inlined_call_operand.vmem [shape: f32[8,2,32], index: 0, kind: input, shape index: {}]   ;;  %s482_s2 = inlined_call_operand.vmem [shape: f32[1,64], index: 2, kind: input, shape index: {}]   ;;  %s483_s3 = inlined_call_operand.vmem [shape: f32[8,2,64], index: 3, kind: output, shape index: {}]  }
   0x1   :  { %v22_v1 = vld [vmem:[%s480_s1] sm:$0xff]  ;;  %v23_v2 = vld [vmem:[%s480_s1 + $0x8] sm:$0xff]  ;;  %v24_v3 = vld [vmem:[%s480_s1 + $0x10] sm:$0xff]  ;;  %v44_v5 = vunpack.c.l.s4 %v324_v4 }
   0x2   :  { %v297_v6 = vpack.c.bf16 %v23_v2, %v22_v1  ;;  %v25_v7 = vld [vmem:[%s480_s1 + $0x18] sm:$0xff]  ;;  %v14_v8 = vld [vmem:[%s481_s0] sm:$0x3]  ;;  %v15_v9 = vld [vmem:[%s481_s0 + $0x2] sm:$0x3]  ;;  %v47_v10 = vshrl.u32 %v46_v0, 7 }
   0x3   :  { %v301_v11 = vpack.c.bf16 %v25_v7, %v24_v3  ;;  %v16_v12 = vld [vmem:[%s481_s0 + $0x4] sm:$0x3]  ;;  %v17_v13 = vld [vmem:[%s481_s0 + $0x6] sm:$0x3]  ;;  %v41_v14 = vcombine.low %v14_v8, %v15_v9  ;;  %v45_v15 = vunpack.c.0.s8 %v44_v5  ;;  %v18_v16 = vld [vmem:[%s481_s0 + $0x8] sm:$0x3] }
   0x4   :  { %298 = vmatprep.subr.bf16.mxu0 %v297_v6  ;;  %v42_v17 = vcombine.low %v16_v12, %v17_v13  ;;  %v19_v18 = vld [vmem:[%s481_s0 + $0xa] sm:$0x3]  ;;  %v20_v19 = vld [vmem:[%s481_s0 + $0xc] sm:$0x3]  ;;  %v21_v20 = vld [vmem:[%s481_s0 + $0xe] sm:$0x3] }
   0x5   :  { %300 = vmatpush3.bf16.msra.mxu0 %v297_v6  ;;  %v48_v21 = vsub.s32 %v45_v15, %v47_v10  ;;  %v58_v22 = vcombine.low %v18_v16, %v19_v18  ;;  %v59_v23 = vcombine.low %v20_v19, %v21_v20  ;;  %v277_v30 = vld [vmem:[%s482_s2] ss:$0 sm:$0xff] }
   0x6   :  { %302 = vmatprep.subr.bf16.mxu0 %v301_v11 }
   0x7   :  { %v49_v24 = vrot.slane %v41_v14, %v48_v21  ;;  %v56_v25 = vrot.slane %v42_v17, %v48_v21  ;;  %v66_v26 = vrot.slane %v58_v22, %v48_v21  ;;  %v73_v27 = vrot.slane %v59_v23, %v48_v21 }
   0x9   :  { %304 = vmatpush3.bf16.msra.mxu0 %v301_v11  ;;  %v57_v28 = vcombine.low %v49_v24, %v56_v25  ;;  %v74_v29 = vcombine.low %v66_v26, %v73_v27 }
   0xb   :  { %294 = vmatprep.mubr.msk.f32.mxu0 %vm75_vm0, %v57_v28 }
   0xc   :  { %295 = vmatmul.mubr.msk.f32.vlgmr.msra.gmra.mrb[0].mxu0 %vm75_vm0, %v74_v29 }
  0xdf   :  { %v296_v31 = vpop.f32.mrb[0].mxu0 }
  0xe0   :  { %v152_v32 = vadd.f32 %v296_v31, %v277_v30  ;;  %v146_v33 = vpop.f32.mrb[1].mxu0 }
  0xe1   :  { %v147_v34 = vadd.f32 %v277_v30, %v146_v33 }
  0xe2   :  { %v174_v35 = vcombine.high %v152_v32, %v152_v32  ;;  %v384_v36 = vrot.slane %v152_v32, %v48_v21 }
  0xe3   :  { %v157_v37 = vcombine.high %v147_v34, %v147_v34  ;;  %v386_v38 = vrot.slane %v147_v34, %v48_v21 }
  0xe4   :  { %v388_v39 = vrot.slane %v174_v35, %v48_v21  ;;  %v392_v40 = vcombine.high %v384_v36, %v384_v36  ;;  %v204_v41 = vsel %vm199_vm1, %v384_v36, -inf }
  0xe5   :  { %v396_v42 = vrot.slane %v157_v37, %v48_v21  ;;  %v400_v43 = vcombine.high %v386_v38, %v386_v38  ;;  %v200_v44 = vsel %vm199_vm1, %v386_v38, -inf }
  0xe6   :  { %v406_v45 = vcombine.high %v388_v39, %v388_v39  ;;  %v206_v46 = vsel %vm199_vm1, %v392_v40, -inf  ;;  %v208_v47 = vsel %vm199_vm1, %v388_v39, -inf  ;;  %v205_v48 = vmax.f32 %v200_v44, %v204_v41 }
  0xe7   :  { %v414_v49 = vcombine.high %v396_v42, %v396_v42  ;;  %v201_v50 = vsel %vm199_vm1, %v400_v43, -inf  ;;  %v202_v51 = vsel %vm199_vm1, %v396_v42, -inf }
  0xe8   :  { %v210_v52 = vsel %vm199_vm1, %v406_v45, -inf  ;;  %v207_v53 = vmax.f32 %v201_v50, %v206_v46  ;;  %v209_v54 = vmax.f32 %v202_v51, %v208_v47 }
  0xe9   :  { %v203_v55 = vsel %vm199_vm1, %v414_v49, -inf }
  0xea   :  { %v211_v56 = vmax.f32 %v203_v55, %v210_v52  ;;  %v212_v57 = vmax.f32 %v205_v48, %v207_v53 }
  0xec   :  { %v213_v58 = vmax.f32 %v209_v54, %v211_v56 }
  0xee   :  { %v214_v59 = vmax.f32 %v212_v57, %v213_v58 }
  0xf0   :  { %v215_v60 = vsub.f32 %v386_v38, %v214_v59  ;;  %v216_v61 = vsub.f32 %v400_v43, %v214_v59  ;;  %v217_v62 = vsub.f32 %v396_v42, %v214_v59  ;;  %v218_v63 = vsub.f32 %v414_v49, %v214_v59 }
  0xf1   :  { %v219_v0 = vsub.f32 %v384_v36, %v214_v59  ;;  %v220_v1 = vsub.f32 %v392_v40, %v214_v59  ;;  %v221_v2 = vsub.f32 %v388_v39, %v214_v59  ;;  %v222_v3 = vsub.f32 %v406_v45, %v214_v59 }
  0xf2   :  { %v223_v4 = vmul.f32 1.442695, %v215_v60  ;;  %v225_v5 = vmul.f32 1.442695, %v216_v61  ;;  %v227_v6 = vmul.f32 1.442695, %v217_v62 }
  0xf3   :  { %v229_v7 = vmul.f32 1.442695, %v218_v63  ;;  %v231_v8 = vmul.f32 1.442695, %v219_v0  ;;  %v233_v9 = vmul.f32 1.442695, %v220_v1 }
  0xf4   :  { %306 = vpow2.f32 %v223_v4  ;;  %v235_v10 = vmul.f32 1.442695, %v221_v2  ;;  %v237_v11 = vmul.f32 1.442695, %v222_v3 }
  0xf5   :  { %308 = vpow2.f32 %v225_v5 }
  0xf6   :  { %310 = vpow2.f32 %v227_v6 }
  0xf7   :  { %312 = vpow2.f32 %v229_v7 }
  0xf8   :  { %314 = vpow2.f32 %v231_v8 }
  0xf9   :  { %316 = vpow2.f32 %v233_v9 }
  0xfa   :  { %318 = vpow2.f32 %v235_v10 }
  0xfb   :  { %320 = vpow2.f32 %v237_v11 }
  0xfe   :  { %v307_v12 = vpop.eup %306 }
  0xff   :  { %v309_v13 = vpop.eup %308  ;;  %v239_v14 = vsel %vm199_vm1, %v307_v12, 0.0 }
 0x100   :  { %v311_v15 = vpop.eup %310  ;;  %v240_v16 = vsel %vm199_vm1, %v309_v13, 0.0 }
 0x101   :  { %v313_v17 = vpop.eup %312  ;;  %v241_v18 = vadd.f32 %v240_v16, %v239_v14  ;;  %v242_v19 = vsel %vm199_vm1, %v311_v15, 0.0 }
 0x102   :  { %v315_v20 = vpop.eup %314  ;;  %v244_v22 = vsel %vm199_vm1, %v313_v17, 0.0 }
 0x103   :  { %v243_v21 = vadd.f32 %v242_v19, %v241_v18  ;;  %v317_v23 = vpop.eup %316  ;;  %v246_v25 = vsel %vm199_vm1, %v315_v20, 0.0 }
 0x104   :  { %v319_v26 = vpop.eup %318  ;;  %v248_v28 = vsel %vm199_vm1, %v317_v23, 0.0 }
 0x105   :  { %v245_v24 = vadd.f32 %v244_v22, %v243_v21  ;;  %v321_v29 = vpop.eup %320  ;;  %v250_v31 = vsel %vm199_vm1, %v319_v26, 0.0 }
 0x106   :  { %v252_v33 = vsel %vm199_vm1, %v321_v29, 0.0 }
 0x107   :  { %v247_v27 = vadd.f32 %v246_v25, %v245_v24 }
 0x109   :  { %v249_v30 = vadd.f32 %v248_v28, %v247_v27 }
 0x10b   :  { %v251_v32 = vadd.f32 %v250_v31, %v249_v30 }
 0x10d   :  { %v253_v34 = vadd.f32 %v252_v33, %v251_v32 }
 0x10f   :  { %322 = vlog2.f32 %v253_v34 }
 0x119   :  { %v323_v35 = vpop.eup %322 }
 0x11a   :  { %v255_v37 = vmul.f32 0.6931472, %v323_v35 }
 0x11c   :  { %v256_v41 = vadd.f32 %v255_v37, %v214_v59 }
 0x11e   :  { %v257_v44 = vsub.f32 %v386_v38, %v256_v41  ;;  %v258_v46 = vsub.f32 %v400_v43, %v256_v41  ;;  %v259_v47 = vsub.f32 %v396_v42, %v256_v41  ;;  %v260_v48 = vsub.f32 %v414_v49, %v256_v41 }
 0x11f   :  { %v261_v50 = vsub.f32 %v384_v36, %v256_v41  ;;  %v262_v51 = vsub.f32 %v392_v40, %v256_v41  ;;  %v263_v52 = vsub.f32 %v388_v39, %v256_v41  ;;  %v264_v53 = vsub.f32 %v406_v45, %v256_v41 }
 0x120   :  { %265 = vst.msk [vmem:[%s483_s3] sm:$0x3] %vm199_vm1, %v257_v44  ;;  %266 = vst.msk [vmem:[%s483_s3 + $0x2] sm:$0x3] %vm199_vm1, %v258_v46 }
 0x121   :  { %267 = vst.msk [vmem:[%s483_s3 + $0x4] sm:$0x3] %vm199_vm1, %v259_v47  ;;  %268 = vst.msk [vmem:[%s483_s3 + $0x6] sm:$0x3] %vm199_vm1, %v260_v48 }
 0x122   :  { %269 = vst.msk [vmem:[%s483_s3 + $0x8] sm:$0x3] %vm199_vm1, %v261_v50  ;;  %270 = vst.msk [vmem:[%s483_s3 + $0xa] sm:$0x3] %vm199_vm1, %v262_v51 }
 0x123   :  { %271 = vst.msk [vmem:[%s483_s3 + $0xc] sm:$0x3] %vm199_vm1, %v263_v52  ;;  %272 = vst.msk [vmem:[%s483_s3 + $0xe] sm:$0x3] %vm199_vm1, %v264_v53 }

// kernel: forward.2
= control target key start
LH: loop header
LB: loop body
LE: loop exit
PB: predicated region body
PF: predicated region fallthrough
CT: control target
= control target key end

     0   :  { %v55_v3 = vlaneseq  ;;  %v1163_v8 = vmov 1983009808   ;;  %v1164_v14 = vmov 0.0|0.0   ;;  %vm1165_vm0 = vmmov 0   ;;  %s1420_s0 = inlined_call_operand.vmem [shape: f32[8,2,32], index: 0, kind: input, shape index: {}]   ;;  %s1421_s1 = inlined_call_operand.vmem [shape: f32[32,32], index: 1, kind: input, shape index: {}]   ;;  %s1422_s2 = inlined_call_operand.vmem [shape: f32[32,32], index: 2, kind: input, shape index: {}]   ;;  %s1423_s3 = inlined_call_operand.vmem [shape: f32[1,32], index: 3, kind: input, shape index: {}]   ;;  %s1424_s4 = inlined_call_operand.vmem [shape: f32[2,32], index: 4, kind: input, shape index: {}]   ;;  %s1425_s5 = inlined_call_operand.vmem [shape: f32[8,2,32], index: 5, kind: output, shape index: {0}]   ;;  %s1426_s6 = inlined_call_operand.hbm [shape: f32[2,32], index: 6, kind: output, shape index: {1}]  }
   0x1   :  { %v31_v0 = vld [vmem:[%s1421_s1] sm:$0xff]  ;;  %v32_v1 = vld [vmem:[%s1421_s1 + $0x8] sm:$0xff]  ;;  %v33_v2 = vld [vmem:[%s1421_s1 + $0x10] sm:$0xff]  ;;  %v53_v9 = vunpack.c.l.s4 %v1163_v8  ;;  %1070 = vmatprep.subr.bf16.mxu1 %v1164_v14  ;;  %v1166_v30 = vmov 0.0  }
   0x2   :  { %v1062_v4 = vpack.c.bf16 %v32_v1, %v31_v0  ;;  %v34_v5 = vld [vmem:[%s1421_s1 + $0x18] sm:$0xff]  ;;  %v23_v6 = vld [vmem:[%s1420_s0] sm:$0x3]  ;;  %v24_v7 = vld [vmem:[%s1420_s0 + $0x2] sm:$0x3]  ;;  %v56_v13 = vshrl.u32 %v55_v3, 7  ;;  %982 = vmatprep.mubr.msk.f32.mxu1 %vm1165_vm0, %v1166_v30 }
   0x3   :  { %v1066_v10 = vpack.c.bf16 %v34_v5, %v33_v2  ;;  %v25_v11 = vld [vmem:[%s1420_s0 + $0x4] sm:$0x3]  ;;  %v26_v12 = vld [vmem:[%s1420_s0 + $0x6] sm:$0x3]  ;;  %v50_v16 = vcombine.low %v23_v6, %v24_v7  ;;  %v54_v18 = vunpack.c.0.s8 %v53_v9  ;;  %v27_v19 = vld [vmem:[%s1420_s0 + $0x8] sm:$0x3] }
   0x4   :  { %v219_v15 = vld [vmem:[%s1422_s2] sm:$0xff]  ;;  %1063 = vmatprep.subr.bf16.mxu0 %v1062_v4  ;;  %v51_v17 = vcombine.low %v25_v11, %v26_v12  ;;  %v28_v20 = vld [vmem:[%s1420_s0 + $0xa] sm:$0x3]  ;;  %v29_v21 = vld [vmem:[%s1420_s0 + $0xc] sm:$0x3] }
   0x5   :  { %1065 = vmatpush3.bf16.msra.mxu0 %v1062_v4  ;;  %v30_v22 = vld [vmem:[%s1420_s0 + $0xe] sm:$0x3]  ;;  %v67_v23 = vcombine.low %v27_v19, %v28_v20  ;;  %v221_v25 = vld [vmem:[%s1422_s2 + $0x10] sm:$0xff]  ;;  %v57_v26 = vsub.s32 %v54_v18, %v56_v13  ;;  %v222_v29 = vld [vmem:[%s1422_s2 + $0x18] sm:$0xff] }
   0x6   :  { %v220_v24 = vld [vmem:[%s1422_s2 + $0x8] sm:$0xff]  ;;  %1067 = vmatprep.subr.bf16.mxu0 %v1066_v10  ;;  %v68_v27 = vcombine.low %v29_v21, %v30_v22 }
   0x7   :  { %v1249_v28 = vpack.c.bf16 %v220_v24, %v219_v15 }
   0x8   :  { %12 = vsyncpa [#allocation3], 0  ;;  %v1256_v31 = vpack.c.bf16 %v222_v29, %v221_v25  ;;  %v58_v32 = vrot.slane %v50_v16, %v57_v26  ;;  %v65_v33 = vrot.slane %v51_v17, %v57_v26  ;;  %v75_v34 = vrot.slane %v67_v23, %v57_v26  ;;  %v217_v38 = vld [vmem:[%s1424_s4] sm:$0x3]  ;;  %s1167_s20 = smov [#allocation2]  }
   0x9   :  { %v82_v35 = vrot.slane %v68_v27, %v57_v26  ;;  %1072 = vmatpush3.bf16.msra.mxu1 %v1249_v28  ;;  %1069 = vmatpush3.bf16.msra.mxu0 %v1066_v10  ;;  %vm84_vm1 = vcmask 261120   ;;  %v892_v39 = vld [vmem:[%s1423_s3] ss:$0 sm:$0xff]  ;;  %vm208_vm2 = vcmask 254976   ;;  %s882_s21 = sshll.u32 %s1167_s20, 4  ;;  %s883_s21 = int_to_ptr.vmem [resolvable:$true] %s882_s21 }
   0xa   :  { %1073 = vmatprep.subr.bf16.mxu1 %v1164_v14  ;;  %v66_v36 = vcombine.low %v58_v32, %v65_v33  ;;  %1076 = vmatprep.subr.bf16.mxu0 %v1164_v14  ;;  %s1139_s24 = scalar_lea.vmem %s883_s21, 32  ;;  %p1144_p1 = scmp.lt.s32.totalorder %s883_s21, %s883_s21 }
   0xb   :  { %v83_v37 = vcombine.low %v75_v34, %v82_v35  ;;  %p1140_p0 = scmp.ne.s32.totalorder %s883_s21, %s1139_s24  ;;  %p1145_p2 = scmp.lt.s32.totalorder %s1139_s24, %s1139_s24 }
   0xc   :  { %971 = vmatprep.mubr.msk.f32.mxu0 %vm84_vm1, %v66_v36 }
   0xd   :  { %1075 = vmatpush3.bf16.msra.mxu1 %v1256_v31  ;;  %972 = vmatmul.mubr.msk.f32.vlgmr.msra.gmra.mrb[0].mxu0 %vm84_vm1, %v83_v37  ;;  %p1146_p3 = por %p1145_p2, %p1144_p1 }
   0xe   :  { %1082 = vmatprep.subr.bf16.mxu1 %v1164_v14  ;;  %1078 = vmatpush3.bf16.msra.mxu0 %v1249_v28 }
   0xf   :  { %993 = vmatprep.mubr.msk.f32.mxu0 %vm1165_vm0, %v1166_v30  ;;  %1079 = vmatprep.subr.bf16.mxu0 %v1164_v14  ;;  %p1147_p4 = pnand %p1146_p3, %p1140_p0 }
  0x10   :  { %983 = vmatmul.mubr.msk.f32.vlgmr.msra.gmra.mrb[0].mxu1 %vm84_vm1, %v217_v38 }
  0x11   :  { %1084 = vmatpush3.bf16.msra.mxu1 %v1249_v28  ;;  %1004 = vmatprep.mubr.msk.f32.mxu1 %vm1165_vm0, %v1166_v30 }
  0x12   :  { %1085 = vmatprep.subr.bf16.mxu1 %v1164_v14  ;;  %1081 = vmatpush3.bf16.msra.mxu0 %v1256_v31 }
  0x13   :  { %1088 = vmatprep.subr.bf16.mxu0 %v1164_v14 }
  0x15   :  { %1087 = vmatpush3.bf16.msra.mxu1 %v1256_v31 }
  0x16   :  { %1094 = vmatprep.subr.bf16.mxu1 %v1164_v14 }
  0xe0   :  { %v973_v40 = vpop.f32.mrb[0].mxu0 }
  0xe1   :  { %v161_v41 = vadd.f32 %v973_v40, %v892_v39  ;;  %v155_v42 = vpop.f32.mrb[1].mxu0 }
  0xe2   :  { %v156_v43 = vadd.f32 %v892_v39, %v155_v42 }
  0xe3   :  { %v292_v44 = vpop.f32.mrb[0].mxu1  ;;  %v183_v45 = vcombine.high %v161_v41, %v161_v41  ;;  %v190_v46 = vrot.slane %v161_v41, %v57_v26 }
  0xe4   :  { %v984_v47 = vpop.f32.mrb[1].mxu1  ;;  %v166_v48 = vcombine.high %v156_v43, %v156_v43  ;;  %v173_v49 = vrot.slane %v156_v43, %v57_v26 }
  0xe5   :  { %v197_v50 = vrot.slane %v183_v45, %v57_v26  ;;  %v198_v51 = vcombine.high %v190_v46, %v190_v46  ;;  %213 = vst.msk [vmem:[%s1425_s5 + $0x8] sm:$0x3] %vm208_vm2, %v190_v46 }
  0xe6   :  { %v180_v52 = vrot.slane %v166_v48, %v57_v26  ;;  %v181_v53 = vcombine.high %v173_v49, %v173_v49  ;;  %209 = vst.msk [vmem:[%s1425_s5] sm:$0x3] %vm208_vm2, %v173_v49 }
  0xe7   :  { %v199_v54 = vcombine.high %v197_v50, %v197_v50  ;;  %214 = vst.msk [vmem:[%s1425_s5 + $0xa] sm:$0x3] %vm208_vm2, %v198_v51  ;;  %215 = vst.msk [vmem:[%s1425_s5 + $0xc] sm:$0x3] %vm208_vm2, %v197_v50 }
  0xe8   :  { %v182_v55 = vcombine.high %v180_v52, %v180_v52  ;;  %210 = vst.msk [vmem:[%s1425_s5 + $0x2] sm:$0x3] %vm208_vm2, %v181_v53  ;;  %211 = vst.msk [vmem:[%s1425_s5 + $0x4] sm:$0x3] %vm208_vm2, %v180_v52 }
  0xe9   :  { %216 = vst.msk [vmem:[%s1425_s5 + $0xe] sm:$0x3] %vm208_vm2, %v199_v54 }
  0xea   :  { %212 = vst.msk [vmem:[%s1425_s5 + $0x6] sm:$0x3] %vm208_vm2, %v182_v55 }
  0xec   :  { %v905_v10 = vld [vmem:[%s1425_s5 + $0x8] sm:$0x3] }
  0xed   :  { %v218_v56 = vld [vmem:[%s1425_s5] sm:$0x3] }
  0xee   :  { %v296_v57 = vadd.f32 %v292_v44, %v218_v56  ;;  %v908_v16 = vld [vmem:[%s1425_s5 + $0xa] sm:$0x3] }
  0xef   :  { %v896_v59 = vld [vmem:[%s1425_s5 + $0x2] sm:$0x3]  ;;  %v899_v0 = vld [vmem:[%s1425_s5 + $0x4] sm:$0x3] }
  0xf0   :  { %1123 = vtanh.f32 %v296_v57  ;;  %v914_v25 = vld [vmem:[%s1425_s5 + $0xe] sm:$0x3] }
  0xf1   :  { %v902_v5 = vld [vmem:[%s1425_s5 + $0x6] sm:$0x3] }
  0xfa   :  { %v1124_v58 = vpop.eup %1123 }
  0xfb   :  { %298 = vst.msk [vmem:[%s1425_s5] sm:$0x3] %vm208_vm2, %v1124_v58  ;;  %994 = vmatmul.mubr.msk.f32.vlgmr.msra.gmra.mrb[2].mxu0 %vm84_vm1, %v1124_v58 }
  0xfc   :  { %1090 = vmatpush3.bf16.msra.mxu0 %v1249_v28  ;;  %1015 = vmatprep.mubr.msk.f32.mxu0 %vm1165_vm0, %v1166_v30 }
  0xfd   :  { %1091 = vmatprep.subr.bf16.mxu0 %v1164_v14 }
 0x100   :  { %1093 = vmatpush3.bf16.msra.mxu0 %v1256_v31 }
 0x101   :  { %1100 = vmatprep.subr.bf16.mxu0 %v1164_v14 }
 0x1ce   :  { %v374_v60 = vpop.f32.mrb[2].mxu0 }
 0x1cf   :  { %v378_v61 = vadd.f32 %v896_v59, %v374_v60  ;;  %v995_v62 = vpop.f32.mrb[3].mxu0 }
 0x1d1   :  { %1125 = vtanh.f32 %v378_v61 }
 0x1db   :  { %v1126_v63 = vpop.eup %1125 }
 0x1dc   :  { %898 = vst.msk [vmem:[%s1425_s5 + $0x2] sm:$0x3] %vm208_vm2, %v1126_v63  ;;  %1005 = vmatmul.mubr.msk.f32.vlgmr.msra.gmra.mrb[2].mxu1 %vm84_vm1, %v1126_v63 }
 0x1dd   :  { %1096 = vmatpush3.bf16.msra.mxu1 %v1249_v28  ;;  %1026 = vmatprep.mubr.msk.f32.mxu1 %vm1165_vm0, %v1166_v30 }
 0x1de   :  { %1097 = vmatprep.subr.bf16.mxu1 %v1164_v14 }
 0x1e1   :  { %1099 = vmatpush3.bf16.msra.mxu1 %v1256_v31 }
 0x1e2   :  { %1106 = vmatprep.subr.bf16.mxu1 %v1164_v14 }
 0x2af   :  { %v456_v1 = vpop.f32.mrb[2].mxu1 }
 0x2b0   :  { %v460_v2 = vadd.f32 %v899_v0, %v456_v1  ;;  %v1006_v3 = vpop.f32.mrb[3].mxu1 }
 0x2b2   :  { %1127 = vtanh.f32 %v460_v2 }
 0x2bc   :  { %v1128_v4 = vpop.eup %1127 }
 0x2bd   :  { %901 = vst.msk [vmem:[%s1425_s5 + $0x4] sm:$0x3] %vm208_vm2, %v1128_v4  ;;  %1016 = vmatmul.mubr.msk.f32.vlgmr.msra.gmra.mrb[4].mxu0 %vm84_vm1, %v1128_v4 }
 0x2be   :  { %1102 = vmatpush3.bf16.msra.mxu0 %v1249_v28  ;;  %1037 = vmatprep.mubr.msk.f32.mxu0 %vm1165_vm0, %v1166_v30 }
 0x2bf   :  { %1103 = vmatprep.subr.bf16.mxu0 %v1164_v14 }
 0x2c2   :  { %1105 = vmatpush3.bf16.msra.mxu0 %v1256_v31 }
 0x2c3   :  { %1112 = vmatprep.subr.bf16.mxu0 %v1164_v14 }
 0x390   :  { %v538_v6 = vpop.f32.mrb[4].mxu0 }
 0x391   :  { %v542_v7 = vadd.f32 %v902_v5, %v538_v6  ;;  %v1017_v8 = vpop.f32.mrb[5].mxu0 }
 0x393   :  { %1129 = vtanh.f32 %v542_v7 }
 0x39d   :  { %v1130_v9 = vpop.eup %1129 }
 0x39e   :  { %904 = vst.msk [vmem:[%s1425_s5 + $0x6] sm:$0x3] %vm208_vm2, %v1130_v9  ;;  %1027 = vmatmul.mubr.msk.f32.vlgmr.msra.gmra.mrb[4].mxu1 %vm84_vm1, %v1130_v9 }
 0x39f   :  { %1108 = vmatpush3.bf16.msra.mxu1 %v1249_v28  ;;  %1048 = vmatprep.mubr.msk.f32.mxu1 %vm1165_vm0, %v1166_v30 }
 0x3a0   :  { %1109 = vmatprep.subr.bf16.mxu1 %v1164_v14 }
 0x3a3   :  { %1111 = vmatpush3.bf16.msra.mxu1 %v1256_v31 }
 0x471   :  { %v620_v11 = vpop.f32.mrb[4].mxu1 }
 0x472   :  { %v624_v12 = vadd.f32 %v905_v10, %v620_v11  ;;  %v1028_v13 = vpop.f32.mrb[5].mxu1 }
 0x474   :  { %1131 = vtanh.f32 %v624_v12 }
 0x47e   :  { %v1132_v15 = vpop.eup %1131 }
 0x47f   :  { %907 = vst.msk [vmem:[%s1425_s5 + $0x8] sm:$0x3] %vm208_vm2, %v1132_v15  ;;  %1038 = vmatmul.mubr.msk.f32.vlgmr.msra.gmra.mrb[6].mxu0 %vm84_vm1, %v1132_v15 }
 0x480   :  { %1114 = vmatpush3.bf16.msra.mxu0 %v1249_v28  ;;  %1059 = vmatprep.mubr.msk.f32.mxu0 %vm1165_vm0, %v1166_v30 }
 0x481   :  { %1115 = vmatprep.subr.bf16.mxu0 %v1164_v14  ;;  %v911_v14 = vld [vmem:[%s1425_s5 + $0xc] sm:$0x3] }
 0x484   :  { %1117 = vmatpush3.bf16.msra.mxu0 %v1256_v31 }
 0x552   :  { %v702_v17 = vpop.f32.mrb[6].mxu0 }
 0x553   :  { %v706_v18 = vadd.f32 %v908_v16, %v702_v17  ;;  %v1039_v19 = vpop.f32.mrb[7].mxu0 }
 0x555   :  { %1133 = vtanh.f32 %v706_v18 }
 0x55f   :  { %v1134_v20 = vpop.eup %1133 }
 0x560   :  { %910 = vst.msk [vmem:[%s1425_s5 + $0xa] sm:$0x3] %vm208_vm2, %v1134_v20  ;;  %1049 = vmatmul.mubr.msk.f32.vlgmr.msra.gmra.mrb[6].mxu1 %vm84_vm1, %v1134_v20 }
 0x633   :  { %v784_v21 = vpop.f32.mrb[6].mxu1 }
 0x634   :  { %v788_v22 = vadd.f32 %v911_v14, %v784_v21  ;;  %v1050_v23 = vpop.f32.mrb[7].mxu1 }
 0x636   :  { %1135 = vtanh.f32 %v788_v22 }
 0x640   :  { %v1136_v24 = vpop.eup %1135 }
 0x641   :  { %913 = vst.msk [vmem:[%s1425_s5 + $0xc] sm:$0x3] %vm208_vm2, %v1136_v24  ;;  %1060 = vmatmul.mubr.msk.f32.vlgmr.msra.gmra.mrb[8].mxu0 %vm84_vm1, %v1136_v24 }
 0x714   :  { %v866_v26 = vpop.f32.mrb[8].mxu0 }
 0x715   :  { %v870_v27 = vadd.f32 %v914_v25, %v866_v26  ;;  %v1061_v28 = vpop.f32.mrb[9].mxu0 }
 0x717   :  { %1137 = vtanh.f32 %v870_v27 }
 0x721   :  { %v1138_v29 = vpop.eup %1137 }
 0x722   :  { %916 = vst.msk [vmem:[%s1425_s5 + $0xe] sm:$0x3] %vm208_vm2, %v1138_v29  ;;  %873 = vst.msk [vmem:[#allocation2] sm:$0x3] %vm208_vm2, %v1138_v29 }
 0x723   :  { %1150 = shalt.err (!%p1147_p4)
}
 0x724   :  { %s1151_s27 = scalar_lea.hbm %s1426_s6, 32 }
 0x725   :  { %p1152_p5 = scmp.ne.s32.totalorder %s1426_s6, %s1151_s27  ;;  %p1155_p6 = scmp.lt.u32.totalorder %s1151_s27, %s1426_s6 }
 0x727   :  { %p1157_p7 = pnand %p1155_p6, %p1152_p5 }
 0x729   :  { %1160 = shalt.err (!%p1157_p7)
}
 0x72a   :  { %885 = dma.vmem_to_hbm [thread:$0]  %s883_s21, 32, %s1426_s6, [#allocation3]  }
 0x72b   :  { %1161 = dma.done.wait [#allocation3], 32  }
 0x72c   :  { %1162 = vsyncadd [#allocation3], 4294967264 }
 0x72d   :  { %891 = vsyncpa [#allocation3], 1 }

</bundles_post_ra>
